<compile_context>
chip_gen: v5e
topology: v5e:2x2
jax: 0.10.0
libtpu: 0.0.40
codegen_flags: <defaults>
</compile_context>

<pallas_src>
import math

import jax
import jax.numpy as jnp
from jax.experimental import pallas as pl
from jax.experimental.pallas import tpu as pltpu

_LOG_2PI = math.log(2.0 * math.pi)
_VAR = 0.5            # cov_var fill value -> covariance = 0.5 * I


def _round_up(x, m):
    return ((x + m - 1) // m) * m


# ---------------------------------------------------------------------------
# Pallas kernel: one (TB, ...) batch tile of evaluate() per grid step.
# ---------------------------------------------------------------------------
def convnet_evaluate_kernel(
    state_ref, action_ref,
    w1_ref, b1_ref, w2_ref, b2_ref, w3_ref, b3_ref,
    w4_ref, b4_ref, w5_ref, b5_ref,
    wh_ref, bh_ref,
    out_ref,
):
    def lin_tanh(x, w_ref, b_ref):
        # bf16 MXU operands, f32 accumulate; bias add + tanh stay in f32 (VPU/EUP).
        y = jnp.dot(x.astype(jnp.bfloat16), w_ref[...],
                    preferred_element_type=jnp.float32)
        return jnp.tanh(y + b_ref[...])

    x = state_ref[...]                                    # (TB, S) f32

    # fullyLayer: 5 x (Linear -> tanh), all bf16 MXU matmuls with f32 accumulate.
    x = lin_tanh(x, w1_ref, b1_ref)                       # (TB, H)
    x = lin_tanh(x, w2_ref, b2_ref)                       # (TB, H)
    x = lin_tanh(x, w3_ref, b3_ref)                       # (TB, H*A)
    x = lin_tanh(x, w4_ref, b4_ref)                       # (TB, H)
    x = lin_tanh(x, w5_ref, b5_ref)                       # (TB, A)

    # Fused action/value head: one matmul; cols [0:A] = action_layer(x),
    # col A = value_layer(x) (biases baked into bh, padding cols are zero).
    A = action_ref.shape[-1]
    head = jnp.dot(x.astype(jnp.bfloat16), wh_ref[...],
                   preferred_element_type=jnp.float32) + bh_ref[...]
    mu = jnp.tanh(head[:, :A])                            # MVN mean (tanh)
    value = head[:, A:A + 1]                              # state value (no tanh)

    # MultivariateNormal(mu, 0.5*I).log_prob(action), all in f32.
    diff = action_ref[...] - mu
    maha = jnp.sum(diff * diff, axis=-1, keepdims=True) * (1.0 / _VAR)
    logp = -0.5 * (maha + A * _LOG_2PI + A * math.log(_VAR))   # (TB, 1)

    # Tiny packed output: col 0 = log_prob, col 1 = value (block == full 2 lanes).
    out_ref[...] = jnp.concatenate([logp, value], axis=-1)     # (TB, 2)


# ---------------------------------------------------------------------------
# One-time kernel-operand preparation (bf16 weights, fused head).
# ---------------------------------------------------------------------------
def prepare_params(params):
    """Build the kernel operand tuple from f32 (in,out) weights / (1,out) biases.

    Weights are cast to bf16 (MXU operands, half the DMA/VMEM); biases stay f32.
    The action/value heads are fused into a single (A, HW) weight + (1, HW) bias.
    """
    A = params["wa"].shape[0]
    HW = _round_up(A + 1, 8)
    wh = jnp.zeros((A, HW), jnp.float32)
    wh = wh.at[:, :A].set(params["wa"]).at[:, A:A + 1].set(params["wv"])
    bh = jnp.zeros((1, HW), jnp.float32)
    bh = bh.at[:, :A].set(params["ba"]).at[:, A:A + 1].set(params["bv"])

    ops = []
    for n in ("1", "2", "3", "4", "5"):
        ops.append(params[f"w{n}"].astype(jnp.bfloat16))
        ops.append(params[f"b{n}"])                      # f32 bias
    ops.append(wh.astype(jnp.bfloat16))
    ops.append(bh)                                       # f32 fused bias
    return tuple(ops)


# ---------------------------------------------------------------------------
# Wrapper
# ---------------------------------------------------------------------------
def convnet_evaluate(state, action, kernel_weights, *, tb_max=1024):
    """state: (B, state_dim) f32, action: (B, action_dim) f32.

    kernel_weights: tuple from prepare_params().
    Returns (log_prob (B,), state_value (B,), entropy (B,)) matching
    ConvNet.evaluate().
    """
    B, S = state.shape
    A = action.shape[-1]

    # Batch tiling: TB rows per grid step (multiple of 8). Large batches are split
    # into >= 2 lane-aligned (multiple-of-128) tiles so v7x's second TensorCore
    # gets work; tiny batches stay as one small tile.
    TB = min(_round_up(B, 8), tb_max)
    if B >= 256 and TB >= B:
        TB = _round_up((B + 1) // 2, 128)
    Bp = _round_up(B, TB)
    if Bp != B:
        state = jnp.pad(state, ((0, Bp - B), (0, 0)))
        action = jnp.pad(action, ((0, Bp - B), (0, 0)))

    def row_spec(d):
        return pl.BlockSpec((TB, d), lambda i: (i, 0))

    def const_spec(arr):
        # Constant index_map -> DMA'd once; Buffered(1) drops the useless second
        # VMEM buffer for every weight/bias operand (halves weight VMEM).
        return pl.BlockSpec(arr.shape, lambda i: (0, 0),
                            pipeline_mode=pl.Buffered(1))

    # Advisory cost estimate so XLA can schedule around the custom call.
    ws = kernel_weights[0::2]
    flops = 2 * Bp * sum(int(w.shape[0]) * int(w.shape[1]) for w in ws)
    transcendentals = Bp * (sum(int(w.shape[1]) for w in ws[:5]) + A)
    bytes_accessed = (
        state.size * state.dtype.itemsize
        + action.size * action.dtype.itemsize
        + sum(int(a.size) * a.dtype.itemsize for a in kernel_weights)
        + Bp * 2 * 4)

    out = pl.pallas_call(
        convnet_evaluate_kernel,
        out_shape=jax.ShapeDtypeStruct((Bp, 2), jnp.float32),
        grid=(Bp // TB,),
        in_specs=[row_spec(S), row_spec(A)]
                 + [const_spec(a) for a in kernel_weights],
        out_specs=pl.BlockSpec((TB, 2), lambda i: (i, 0)),
        compiler_params=pltpu.CompilerParams(
            dimension_semantics=("parallel",),
            # Explicit scoped-VMEM budget: safe on all gens (v7x has 64 MiB
            # physical, v5e's default scoped limit is only ~16 MiB).
            vmem_limit_bytes=48 * 1024 * 1024),
        cost_estimate=pl.CostEstimate(
            flops=int(flops),
            transcendentals=int(transcendentals),
            bytes_accessed=int(bytes_accessed)),
    )(state, action, *kernel_weights)

    logp = out[:B, 0]
    value = out[:B, 1]
    # Entropy of MVN(mu, 0.5*I) is a per-row constant -> no kernel output needed.
    ent_const = 0.5 * A * (1.0 + _LOG_2PI) + 0.5 * A * math.log(_VAR)
    ent = jnp.full((B,), ent_const, jnp.float32)
    return logp, value, ent


# ---------------------------------------------------------------------------
# Deterministic parameter init (mimics nn.Linear's U(-1/sqrt(fan_in), +)),
# weights stored transposed as (in, out), biases as (1, out), all f32.
# ---------------------------------------------------------------------------
def init_params(key, state_dim, action_dim, n_latent_var):
    dims = [
        ("1", state_dim, n_latent_var),
        ("2", n_latent_var, n_latent_var),
        ("3", n_latent_var, n_latent_var * action_dim),
        ("4", n_latent_var * action_dim, n_latent_var),
        ("5", n_latent_var, action_dim),
        ("a", action_dim, action_dim),
        ("v", action_dim, 1),
    ]
    params = {}
    for name, fan_in, fan_out in dims:
        key, kw, kb = jax.random.split(key, 3)
        bound = 1.0 / math.sqrt(fan_in)
        params[f"w{name}"] = jax.random.uniform(
            kw, (fan_in, fan_out), jnp.float32, -bound, bound)
        params[f"b{name}"] = jax.random.uniform(
            kb, (1, fan_out), jnp.float32, -bound, bound)
    return params


# ---------------------------------------------------------------------------
# Pure-JAX f32 reference (correctness check)
# ---------------------------------------------------------------------------
def reference_evaluate(state, action, params):
    x = state
    for n in ("1", "2", "3", "4", "5"):
        x = jnp.tanh(x @ params[f"w{n}"] + params[f"b{n}"])
    mu = jnp.tanh(x @ params["wa"] + params["ba"])
    A = mu.shape[-1]
    diff = action - mu
    logp = -0.5 * (jnp.sum(diff * diff, axis=-1) / _VAR
                   + A * _LOG_2PI + A * math.log(_VAR))
    value = (x @ params["wv"] + params["bv"])[:, 0]
    ent = jnp.full((state.shape[0],),
                   0.5 * A * (1.0 + _LOG_2PI) + 0.5 * A * math.log(_VAR),
                   jnp.float32)
    return logp, value, ent


if __name__ == "__main__":
    B, STATE_DIM, ACTION_DIM, N_LATENT = 8, 16, 8, 32

    key = jax.random.PRNGKey(0)
    kp, ks, ka = jax.random.split(key, 3)
    params = init_params(kp, STATE_DIM, ACTION_DIM, N_LATENT)
    kernel_weights = prepare_params(params)
    state = jax.random.normal(ks, (B, STATE_DIM), jnp.float32)
    action = jax.random.normal(ka, (B, ACTION_DIM), jnp.float32)

    logp, value, ent = convnet_evaluate(state, action, kernel_weights)
    jax.block_until_ready((logp, value, ent))

    logp_ref, value_ref, ent_ref = reference_evaluate(state, action, params)
    # bf16 MXU operands vs pure-f32 reference -> loosened tolerances.
    assert jnp.allclose(logp, logp_ref, atol=5e-2, rtol=5e-2), (
        float(jnp.max(jnp.abs(logp - logp_ref))))
    assert jnp.allclose(value, value_ref, atol=5e-2, rtol=5e-2), (
        float(jnp.max(jnp.abs(value - value_ref))))
    assert jnp.allclose(ent, ent_ref, atol=1e-5, rtol=1e-5)

    print("KERNEL_OK")
</pallas_src>

<mosaic_0001>
module attributes {stable_mosaic.version = 11 : i64} {
  func.func @convnet_evaluate_kernel(%arg0: i32, %arg1: memref<8x16xf32, #tpu.memory_space<vmem>>, %arg2: memref<8x8xf32, #tpu.memory_space<vmem>>, %arg3: memref<16x32xbf16, #tpu.memory_space<vmem>>, %arg4: memref<1x32xf32, #tpu.memory_space<vmem>>, %arg5: memref<32x32xbf16, #tpu.memory_space<vmem>>, %arg6: memref<1x32xf32, #tpu.memory_space<vmem>>, %arg7: memref<32x256xbf16, #tpu.memory_space<vmem>>, %arg8: memref<1x256xf32, #tpu.memory_space<vmem>>, %arg9: memref<256x32xbf16, #tpu.memory_space<vmem>>, %arg10: memref<1x32xf32, #tpu.memory_space<vmem>>, %arg11: memref<32x8xbf16, #tpu.memory_space<vmem>>, %arg12: memref<1x8xf32, #tpu.memory_space<vmem>>, %arg13: memref<8x16xbf16, #tpu.memory_space<vmem>>, %arg14: memref<1x16xf32, #tpu.memory_space<vmem>>, %arg15: memref<8x2xf32, #tpu.memory_space<vmem>>) attributes {dimension_semantics = [#tpu.dimension_semantics<parallel>], iteration_bounds = array<i64: 1>, scalar_prefetch = 0 : i64, scratch_operands = 0 : i64, tpu.core_type = #tpu.core_type<tc>, window_params = [{transform_indices = @transform_0, window_bounds = array<i64: 8, 16>}, {transform_indices = @transform_1, window_bounds = array<i64: 8, 8>}, {pipeline_mode = #tpu.pipeline_mode<synchronous>, transform_indices = @transform_2, window_bounds = array<i64: 16, 32>}, {pipeline_mode = #tpu.pipeline_mode<synchronous>, transform_indices = @transform_3, window_bounds = array<i64: 1, 32>}, {pipeline_mode = #tpu.pipeline_mode<synchronous>, transform_indices = @transform_4, window_bounds = array<i64: 32, 32>}, {pipeline_mode = #tpu.pipeline_mode<synchronous>, transform_indices = @transform_5, window_bounds = array<i64: 1, 32>}, {pipeline_mode = #tpu.pipeline_mode<synchronous>, transform_indices = @transform_6, window_bounds = array<i64: 32, 256>}, {pipeline_mode = #tpu.pipeline_mode<synchronous>, transform_indices = @transform_7, window_bounds = array<i64: 1, 256>}, {pipeline_mode = #tpu.pipeline_mode<synchronous>, transform_indices = @transform_8, window_bounds = array<i64: 256, 32>}, {pipeline_mode = #tpu.pipeline_mode<synchronous>, transform_indices = @transform_9, window_bounds = array<i64: 1, 32>}, {pipeline_mode = #tpu.pipeline_mode<synchronous>, transform_indices = @transform_10, window_bounds = array<i64: 32, 8>}, {pipeline_mode = #tpu.pipeline_mode<synchronous>, transform_indices = @transform_11, window_bounds = array<i64: 1, 8>}, {pipeline_mode = #tpu.pipeline_mode<synchronous>, transform_indices = @transform_12, window_bounds = array<i64: 8, 16>}, {pipeline_mode = #tpu.pipeline_mode<synchronous>, transform_indices = @transform_13, window_bounds = array<i64: 1, 16>}, {transform_indices = @transform_14, window_bounds = array<i64: 8, 2>}]} {
    %c0 = arith.constant 0 : index
    %c0_0 = arith.constant 0 : index
    %0 = vector.load %arg1[%c0, %c0_0] : memref<8x16xf32, #tpu.memory_space<vmem>>, vector<8x16xf32>
    %1 = arith.truncf %0 : vector<8x16xf32> to vector<8x16xbf16>
    %c0_1 = arith.constant 0 : index
    %c0_2 = arith.constant 0 : index
    %2 = vector.load %arg3[%c0_1, %c0_2] : memref<16x32xbf16, #tpu.memory_space<vmem>>, vector<16x32xbf16>
    %cst = arith.constant dense<0.000000e+00> : vector<8x32xf32>
    %3 = tpu.matmul %1, %2, %cst {dimension_numbers = #tpu.dot_dimension_numbers<[1], [0], [0], [1], [0, 0, 1, 1], [], []>} : vector<8x16xbf16>, vector<16x32xbf16>, vector<8x32xf32> -> vector<8x32xf32>
    %c0_3 = arith.constant 0 : index
    %c0_4 = arith.constant 0 : index
    %4 = vector.load %arg4[%c0_3, %c0_4] : memref<1x32xf32, #tpu.memory_space<vmem>>, vector<1x32xf32>
    %5 = vector.broadcast %4 : vector<1x32xf32> to vector<8x32xf32>
    %6 = arith.addf %3, %5 : vector<8x32xf32>
    %7 = math.tanh %6 : vector<8x32xf32>
    %8 = arith.truncf %7 : vector<8x32xf32> to vector<8x32xbf16>
    %c0_5 = arith.constant 0 : index
    %c0_6 = arith.constant 0 : index
    %9 = vector.load %arg5[%c0_5, %c0_6] : memref<32x32xbf16, #tpu.memory_space<vmem>>, vector<32x32xbf16>
    %cst_7 = arith.constant dense<0.000000e+00> : vector<8x32xf32>
    %10 = tpu.matmul %8, %9, %cst_7 {dimension_numbers = #tpu.dot_dimension_numbers<[1], [0], [0], [1], [0, 0, 1, 1], [], []>} : vector<8x32xbf16>, vector<32x32xbf16>, vector<8x32xf32> -> vector<8x32xf32>
    %c0_8 = arith.constant 0 : index
    %c0_9 = arith.constant 0 : index
    %11 = vector.load %arg6[%c0_8, %c0_9] : memref<1x32xf32, #tpu.memory_space<vmem>>, vector<1x32xf32>
    %12 = vector.broadcast %11 : vector<1x32xf32> to vector<8x32xf32>
    %13 = arith.addf %10, %12 : vector<8x32xf32>
    %14 = math.tanh %13 : vector<8x32xf32>
    %15 = arith.truncf %14 : vector<8x32xf32> to vector<8x32xbf16>
    %c0_10 = arith.constant 0 : index
    %c0_11 = arith.constant 0 : index
    %16 = vector.load %arg7[%c0_10, %c0_11] : memref<32x256xbf16, #tpu.memory_space<vmem>>, vector<32x256xbf16>
    %cst_12 = arith.constant dense<0.000000e+00> : vector<8x256xf32>
    %17 = tpu.matmul %15, %16, %cst_12 {dimension_numbers = #tpu.dot_dimension_numbers<[1], [0], [0], [1], [0, 0, 1, 1], [], []>} : vector<8x32xbf16>, vector<32x256xbf16>, vector<8x256xf32> -> vector<8x256xf32>
    %c0_13 = arith.constant 0 : index
    %c0_14 = arith.constant 0 : index
    %18 = vector.load %arg8[%c0_13, %c0_14] : memref<1x256xf32, #tpu.memory_space<vmem>>, vector<1x256xf32>
    %19 = vector.broadcast %18 : vector<1x256xf32> to vector<8x256xf32>
    %20 = arith.addf %17, %19 : vector<8x256xf32>
    %21 = math.tanh %20 : vector<8x256xf32>
    %22 = arith.truncf %21 : vector<8x256xf32> to vector<8x256xbf16>
    %c0_15 = arith.constant 0 : index
    %c0_16 = arith.constant 0 : index
    %23 = vector.load %arg9[%c0_15, %c0_16] : memref<256x32xbf16, #tpu.memory_space<vmem>>, vector<256x32xbf16>
    %cst_17 = arith.constant dense<0.000000e+00> : vector<8x32xf32>
    %24 = tpu.matmul %22, %23, %cst_17 {dimension_numbers = #tpu.dot_dimension_numbers<[1], [0], [0], [1], [0, 0, 1, 1], [], []>} : vector<8x256xbf16>, vector<256x32xbf16>, vector<8x32xf32> -> vector<8x32xf32>
    %c0_18 = arith.constant 0 : index
    %c0_19 = arith.constant 0 : index
    %25 = vector.load %arg10[%c0_18, %c0_19] : memref<1x32xf32, #tpu.memory_space<vmem>>, vector<1x32xf32>
    %26 = vector.broadcast %25 : vector<1x32xf32> to vector<8x32xf32>
    %27 = arith.addf %24, %26 : vector<8x32xf32>
    %28 = math.tanh %27 : vector<8x32xf32>
    %29 = arith.truncf %28 : vector<8x32xf32> to vector<8x32xbf16>
    %c0_20 = arith.constant 0 : index
    %c0_21 = arith.constant 0 : index
    %30 = vector.load %arg11[%c0_20, %c0_21] : memref<32x8xbf16, #tpu.memory_space<vmem>>, vector<32x8xbf16>
    %cst_22 = arith.constant dense<0.000000e+00> : vector<8x8xf32>
    %31 = tpu.matmul %29, %30, %cst_22 {dimension_numbers = #tpu.dot_dimension_numbers<[1], [0], [0], [1], [0, 0, 1, 1], [], []>} : vector<8x32xbf16>, vector<32x8xbf16>, vector<8x8xf32> -> vector<8x8xf32>
    %c0_23 = arith.constant 0 : index
    %c0_24 = arith.constant 0 : index
    %32 = vector.load %arg12[%c0_23, %c0_24] : memref<1x8xf32, #tpu.memory_space<vmem>>, vector<1x8xf32>
    %33 = vector.broadcast %32 : vector<1x8xf32> to vector<8x8xf32>
    %34 = arith.addf %31, %33 : vector<8x8xf32>
    %35 = math.tanh %34 : vector<8x8xf32>
    %36 = arith.truncf %35 : vector<8x8xf32> to vector<8x8xbf16>
    %c0_25 = arith.constant 0 : index
    %c0_26 = arith.constant 0 : index
    %37 = vector.load %arg13[%c0_25, %c0_26] : memref<8x16xbf16, #tpu.memory_space<vmem>>, vector<8x16xbf16>
    %cst_27 = arith.constant dense<0.000000e+00> : vector<8x16xf32>
    %38 = tpu.matmul %36, %37, %cst_27 {dimension_numbers = #tpu.dot_dimension_numbers<[1], [0], [0], [1], [0, 0, 1, 1], [], []>} : vector<8x8xbf16>, vector<8x16xbf16>, vector<8x16xf32> -> vector<8x16xf32>
    %c0_28 = arith.constant 0 : index
    %c0_29 = arith.constant 0 : index
    %39 = vector.load %arg14[%c0_28, %c0_29] : memref<1x16xf32, #tpu.memory_space<vmem>>, vector<1x16xf32>
    %40 = vector.broadcast %39 : vector<1x16xf32> to vector<8x16xf32>
    %41 = arith.addf %38, %40 : vector<8x16xf32>
    %42 = vector.extract_strided_slice %41 {offsets = [0, 0], sizes = [8, 8], strides = [1, 1]} : vector<8x16xf32> to vector<8x8xf32>
    %43 = math.tanh %42 : vector<8x8xf32>
    %44 = vector.extract_strided_slice %41 {offsets = [0, 8], sizes = [8, 1], strides = [1, 1]} : vector<8x16xf32> to vector<8x1xf32>
    %c0_30 = arith.constant 0 : index
    %c0_31 = arith.constant 0 : index
    %45 = vector.load %arg2[%c0_30, %c0_31] : memref<8x8xf32, #tpu.memory_space<vmem>>, vector<8x8xf32>
    %46 = arith.subf %45, %43 : vector<8x8xf32>
    %47 = arith.mulf %46, %46 : vector<8x8xf32>
    %cst_32 = arith.constant dense<0.000000e+00> : vector<8xf32>
    %48 = vector.multi_reduction <add>, %47, %cst_32 [1] : vector<8x8xf32> to vector<8xf32>
    %49 = vector.shape_cast %48 : vector<8xf32> to vector<8x1xf32>
    %cst_33 = arith.constant 2.000000e+00 : f32
    %50 = vector.broadcast %cst_33 : f32 to vector<8x1xf32>
    %51 = arith.mulf %49, %50 : vector<8x1xf32>
    %cst_34 = arith.constant 14.7030163 : f32
    %52 = vector.broadcast %cst_34 : f32 to vector<8x1xf32>
    %53 = arith.addf %51, %52 : vector<8x1xf32>
    %cst_35 = arith.constant -5.54517746 : f32
    %54 = vector.broadcast %cst_35 : f32 to vector<8x1xf32>
    %55 = arith.addf %53, %54 : vector<8x1xf32>
    %cst_36 = arith.constant -5.000000e-01 : f32
    %56 = vector.broadcast %cst_36 : f32 to vector<8x1xf32>
    %57 = arith.mulf %56, %55 : vector<8x1xf32>
    %58 = tpu.concatenate %57, %44 in 1 : vector<8x1xf32>, vector<8x1xf32> -> vector<8x2xf32>
    %c0_37 = arith.constant 0 : index
    %c0_38 = arith.constant 0 : index
    %59 = vector.load %arg15[%c0_37, %c0_38] : memref<8x2xf32, #tpu.memory_space<vmem>>, vector<8x2xf32>
    tpu.vector_store %arg15[%c0_37, %c0_38], %58 {strides = array<i32>} : memref<8x2xf32, #tpu.memory_space<vmem>>, vector<8x2xf32>,
    return
  }
  func.func @transform_0(%arg0: i32) -> (i32, i32) {
    %c0_i32 = arith.constant 0 : i32
    %c0_i32_0 = arith.constant 0 : i32
    return %arg0, %c0_i32 : i32, i32
  }
  func.func @transform_1(%arg0: i32) -> (i32, i32) {
    %c0_i32 = arith.constant 0 : i32
    %c0_i32_0 = arith.constant 0 : i32
    return %arg0, %c0_i32 : i32, i32
  }
  func.func @transform_2(%arg0: i32) -> (i32, i32) {
    %c0_i32 = arith.constant 0 : i32
    %c0_i32_0 = arith.constant 0 : i32
    %c0_i32_1 = arith.constant 0 : i32
    return %c0_i32, %c0_i32_0 : i32, i32
  }
  func.func @transform_3(%arg0: i32) -> (i32, i32) {
    %c0_i32 = arith.constant 0 : i32
    %c0_i32_0 = arith.constant 0 : i32
    %c0_i32_1 = arith.constant 0 : i32
    return %c0_i32, %c0_i32_0 : i32, i32
  }
  func.func @transform_4(%arg0: i32) -> (i32, i32) {
    %c0_i32 = arith.constant 0 : i32
    %c0_i32_0 = arith.constant 0 : i32
    %c0_i32_1 = arith.constant 0 : i32
    return %c0_i32, %c0_i32_0 : i32, i32
  }
  func.func @transform_5(%arg0: i32) -> (i32, i32) {
    %c0_i32 = arith.constant 0 : i32
    %c0_i32_0 = arith.constant 0 : i32
    %c0_i32_1 = arith.constant 0 : i32
    return %c0_i32, %c0_i32_0 : i32, i32
  }
  func.func @transform_6(%arg0: i32) -> (i32, i32) {
    %c0_i32 = arith.constant 0 : i32
    %c0_i32_0 = arith.constant 0 : i32
    %c0_i32_1 = arith.constant 0 : i32
    return %c0_i32, %c0_i32_0 : i32, i32
  }
  func.func @transform_7(%arg0: i32) -> (i32, i32) {
    %c0_i32 = arith.constant 0 : i32
    %c0_i32_0 = arith.constant 0 : i32
    %c0_i32_1 = arith.constant 0 : i32
    return %c0_i32, %c0_i32_0 : i32, i32
  }
  func.func @transform_8(%arg0: i32) -> (i32, i32) {
    %c0_i32 = arith.constant 0 : i32
    %c0_i32_0 = arith.constant 0 : i32
    %c0_i32_1 = arith.constant 0 : i32
    return %c0_i32, %c0_i32_0 : i32, i32
  }
  func.func @transform_9(%arg0: i32) -> (i32, i32) {
    %c0_i32 = arith.constant 0 : i32
    %c0_i32_0 = arith.constant 0 : i32
    %c0_i32_1 = arith.constant 0 : i32
    return %c0_i32, %c0_i32_0 : i32, i32
  }
  func.func @transform_10(%arg0: i32) -> (i32, i32) {
    %c0_i32 = arith.constant 0 : i32
    %c0_i32_0 = arith.constant 0 : i32
    %c0_i32_1 = arith.constant 0 : i32
    return %c0_i32, %c0_i32_0 : i32, i32
  }
  func.func @transform_11(%arg0: i32) -> (i32, i32) {
    %c0_i32 = arith.constant 0 : i32
    %c0_i32_0 = arith.constant 0 : i32
    %c0_i32_1 = arith.constant 0 : i32
    return %c0_i32, %c0_i32_0 : i32, i32
  }
  func.func @transform_12(%arg0: i32) -> (i32, i32) {
    %c0_i32 = arith.constant 0 : i32
    %c0_i32_0 = arith.constant 0 : i32
    %c0_i32_1 = arith.constant 0 : i32
    return %c0_i32, %c0_i32_0 : i32, i32
  }
  func.func @transform_13(%arg0: i32) -> (i32, i32) {
    %c0_i32 = arith.constant 0 : i32
    %c0_i32_0 = arith.constant 0 : i32
    %c0_i32_1 = arith.constant 0 : i32
    return %c0_i32, %c0_i32_0 : i32, i32
  }
  func.func @transform_14(%arg0: i32) -> (i32, i32) {
    %c0_i32 = arith.constant 0 : i32
    %c0_i32_0 = arith.constant 0 : i32
    return %arg0, %c0_i32 : i32, i32
  }
}

</mosaic_0001>

<bundles_post_ra>
// kernel: tpu_custom_call.1
= control target key start
LH: loop header
LB: loop body
LE: loop exit
PB: predicated region body
PF: predicated region fallthrough
CT: control target
= control target key end

     0   :  { %vm62_vm0 = vcmask 130048   ;;  %vm101_vm1 = vcmask 261120   ;;  %vm390_vm2 = vcmask 1043456   ;;  %vm386_vm3 = vcmask 64512   ;;  %s778_s2 = inlined_call_operand.vmem [shape: bf16[16,32], index: 2, kind: input, shape index: {}]   ;;  %s779_s0 = inlined_call_operand.vmem [shape: f32[8,16], index: 0, kind: input, shape index: {}]   ;;  %s780_s3 = inlined_call_operand.vmem [shape: f32[1,32], index: 3, kind: input, shape index: {}]   ;;  %s781_s5 = inlined_call_operand.vmem [shape: f32[1,32], index: 5, kind: input, shape index: {}]   ;;  %s782_s4 = inlined_call_operand.vmem [shape: bf16[32,32], index: 4, kind: input, shape index: {}]   ;;  %s783_s6 = inlined_call_operand.vmem [shape: bf16[32,256], index: 6, kind: input, shape index: {}]   ;;  %s784_s8 = inlined_call_operand.vmem [shape: bf16[256,32], index: 8, kind: input, shape index: {}]   ;;  %s785_s9 = inlined_call_operand.vmem [shape: f32[1,32], index: 9, kind: input, shape index: {}]   ;;  %s786_s10 = inlined_call_operand.vmem [shape: bf16[32,8], index: 10, kind: input, shape index: {}]   ;;  %s787_s7 = inlined_call_operand.vmem [shape: f32[1,256], index: 7, kind: input, shape index: {}]   ;;  %s788_s11 = inlined_call_operand.vmem [shape: f32[1,8], index: 11, kind: input, shape index: {}]   ;;  %s789_s12 = inlined_call_operand.vmem [shape: bf16[8,16], index: 12, kind: input, shape index: {}]   ;;  %s790_s13 = inlined_call_operand.vmem [shape: f32[1,16], index: 13, kind: input, shape index: {}]   ;;  %s791_s1 = inlined_call_operand.vmem [shape: f32[8,8], index: 1, kind: input, shape index: {}]   ;;  %s792_s14 = inlined_call_operand.vmem [shape: f32[8,2], index: 14, kind: output, shape index: {}]  }
   0x1   :  { %v536_v0 = vld [vmem:[%s778_s2] sm:$0xff]  ;;  %v538_v3 = vld [vmem:[%s782_s4 + $0x8] sm:$0xff]  ;;  %v454_v11 = vld [vmem:[%s783_s6 + $0x10] sm:$0xf]  ;;  %vm422_vm4 = vcmask 7168   ;;  %vm424_vm5 = vcmask 15360  }
   0x2   :  { %v48_v1 = vld [vmem:[%s779_s0] sm:$0xff]  ;;  %73 = vmatpush.bf16.msra.mxu0 %v536_v0  ;;  %111 = vmatpush.bf16.msra.mxu1 %v538_v3  ;;  %v542_v12 = vld [vmem:[%s783_s6 + $0x14] sm:$0xf0]  ;;  %v541_v13 = vld [vmem:[%s783_s6 + $0x14] sm:$0xf] }
   0x3   :  { %v49_v2 = vpack.c.bf16 %v48_v1, %v48_v1  ;;  %v537_v4 = vld [vmem:[%s782_s4] sm:$0xff]  ;;  %v455_v14 = vor.u32 %v542_v12, %v454_v11  ;;  %v456_v15 = vld [vmem:[%s783_s6 + $0x18] sm:$0xf0]  ;;  %v540_v18 = vld [vmem:[%s783_s6 + $0x4] sm:$0xf0] }
   0x4   :  { %v562_v5 = vld [vmem:[%s780_s3] ss:$0 sm:$0xff]  ;;  %v459_v16 = vor.u32 %v541_v13, %v456_v15  ;;  %v539_v19 = vld [vmem:[%s783_s6 + $0x4] sm:$0xf]  ;;  %v448_v21 = vld [vmem:[%s783_s6 + $0x8] sm:$0xf0] }
   0x5   :  { %434 = vmatmul.msk.bf16.vlgmr.msra.gmra.mxu0 %vm62_vm0, %v49_v2  ;;  %159 = vmatpush.bf16.msra.mxu2 %v455_v14  ;;  %v446_v17 = vld [vmem:[%s783_s6] sm:$0xf]  ;;  %v451_v22 = vor.u32 %v539_v19, %v448_v21  ;;  %v550_v23 = vld [vmem:[%s784_s8 + $0x38] sm:$0xff]  ;;  %v549_v25 = vld [vmem:[%s784_s8 + $0x30] sm:$0xff] }
   0x6   :  { %112 = vmatpush.bf16.msra.mxu1 %v537_v4  ;;  %172 = vmatpush.bf16.msra.mxu3 %v459_v16  ;;  %v447_v20 = vor.u32 %v540_v18, %v446_v17  ;;  %v558_v24 = vld [vmem:[%s784_s8 + $0x78] sm:$0xff]  ;;  %v557_v26 = vld [vmem:[%s784_s8 + $0x70] sm:$0xff]  ;;  %v548_v27 = vld [vmem:[%s784_s8 + $0x28] sm:$0xff] }
   0x7   :  { %315 = vmatpush.bf16.msrb.mxu0 %v550_v23  ;;  %v556_v28 = vld [vmem:[%s784_s8 + $0x68] sm:$0xff]  ;;  %v547_v29 = vld [vmem:[%s784_s8 + $0x20] sm:$0xff]  ;;  %v546_v31 = vld [vmem:[%s784_s8 + $0x18] sm:$0xff] }
   0x8   :  { %v555_v30 = vld [vmem:[%s784_s8 + $0x60] sm:$0xff]  ;;  %v554_v32 = vld [vmem:[%s784_s8 + $0x58] sm:$0xff]  ;;  %v545_v39 = vld [vmem:[%s784_s8 + $0x10] sm:$0xff] }
   0x9   :  { %160 = vmatpush.bf16.msra.mxu2 %v447_v20  ;;  %v563_v33 = vld [vmem:[%s781_s5] ss:$0 sm:$0xff]  ;;  %v553_v40 = vld [vmem:[%s784_s8 + $0x50] sm:$0xff]  ;;  %v544_v41 = vld [vmem:[%s784_s8 + $0x8] sm:$0xff] }
   0xa   :  { %173 = vmatpush.bf16.msra.mxu3 %v451_v22  ;;  %328 = vmatpush.bf16.msrb.mxu1 %v558_v24  ;;  %v552_v42 = vld [vmem:[%s784_s8 + $0x48] sm:$0xff]  ;;  %v543_v43 = vld [vmem:[%s784_s8] sm:$0xff] }
   0xb   :  { %316 = vmatpush.bf16.msrb.mxu0 %v549_v25  ;;  %v551_v44 = vld [vmem:[%s784_s8 + $0x40] sm:$0xff]  ;;  %v560_v45 = vld [vmem:[%s786_s10 + $0x8] sm:$0xff] }
   0xc   :  { %v124_v46 = vld [vmem:[%s787_s7] sm:$0x3] }
   0xd   :  { %372 = vmatpush.bf16.msrb.mxu2 %v560_v45  ;;  %v126_v47 = vperm.slane %v124_v46, 0  ;;  %v127_v48 = vperm.slane %v124_v46, 1  ;;  %v559_v59 = vld [vmem:[%s786_s10] sm:$0xff] }
   0xe   :  { %329 = vmatpush.bf16.msrb.mxu1 %v557_v26  ;;  %v381_v60 = vld [vmem:[%s789_s12] sm:$0xf] }
   0xf   :  { %317 = vmatpush.bf16.msrb.mxu0 %v548_v27  ;;  %v392_v61 = vsel %vm390_vm2, %v381_v60, 0  ;;  %v564_v62 = vld [vmem:[%s785_s9] ss:$0 sm:$0xff] }
  0x10   :  { %401 = vmatpush.bf16.msrb.mxu3 %v392_v61  ;;  %v566_v13 = vld [vmem:[%s790_s13] ss:$0 sm:$0xff] }
  0x11   :  { %373 = vmatpush.bf16.msrb.mxu2 %v559_v59  ;;  %v408_v16 = vld [vmem:[%s791_s1] sm:$0xff] }
  0x12   :  { %330 = vmatpush.bf16.msrb.mxu1 %v556_v28 }
  0x13   :  { %318 = vmatpush.bf16.msrb.mxu0 %v547_v29 }
  0x16   :  { %331 = vmatpush.bf16.msrb.mxu1 %v555_v30 }
  0x17   :  { %319 = vmatpush.bf16.msrb.mxu0 %v546_v31 }
  0x1a   :  { %332 = vmatpush.bf16.msrb.mxu1 %v554_v32 }
  0x1b   :  { %320 = vmatpush.bf16.msrb.mxu0 %v545_v39 }
  0x1e   :  { %333 = vmatpush.bf16.msrb.mxu1 %v553_v40 }
  0x1f   :  { %321 = vmatpush.bf16.msrb.mxu0 %v544_v41 }
  0x22   :  { %334 = vmatpush.bf16.msrb.mxu1 %v552_v42 }
  0x23   :  { %322 = vmatpush.bf16.msrb.mxu0 %v543_v43 }
  0x26   :  { %335 = vmatpush.bf16.msrb.mxu1 %v551_v44 }
  0x82   :  { %v75_v6 = vpop.f32.mrf.mxu0 }
  0x83   :  { %v76_v7 = vadd.f32 %v562_v5, %v75_v6 }
  0x85   :  { %567 = vtanh.f32 %v76_v7  ;;  %v565_v7 = vld [vmem:[%s788_s11] ss:$0 sm:$0xff]  ;;  %s581_s11 = smov 121  }
  0x8a   :  { %v77_v8 = vpop.f32.mrf.mxu0 }
  0x8b   :  { %v568_v9 = vpop.eup %567 }
  0x8c   :  { %v80_v10 = vpack.c.bf16 %v568_v9, %v568_v9 }
  0x8e   :  { %443 = vmatmul.msk.bf16.vlgmr.msra.gmra.mxu1 %vm101_vm1, %v80_v10 }
 0x10b   :  { %v114_v34 = vpop.f32.mrf.mxu1 }
 0x10c   :  { %v115_v35 = vadd.f32 %v563_v33, %v114_v34 }
 0x10e   :  { %569 = vtanh.f32 %v115_v35 }
 0x113   :  { %v116_v36 = vpop.f32.mrf.mxu1 }
 0x114   :  { %v570_v37 = vpop.eup %569 }
 0x115   :  { %v119_v38 = vpack.c.bf16 %v570_v37, %v570_v37 }
 0x117   :  { %460 = vmatmul.msk.bf16.vlgmr.msra.gmra.mxu2 %vm101_vm1, %v119_v38  ;;  %461 = vmatmul.msk.bf16.vlgmr.msra.gmra.mxu3 %vm101_vm1, %v119_v38 }
 0x19a   :  { %v162_v49 = vpop.f32.mrf.mxu2  ;;  %v175_v50 = vpop.f32.mrf.mxu3 }
 0x19b   :  { %v163_v51 = vadd.f32 %v162_v49, %v126_v47  ;;  %v176_v52 = vadd.f32 %v175_v50, %v127_v48 }
 0x19d   :  { %571 = vtanh.f32 %v163_v51 }
 0x19e   :  { %573 = vtanh.f32 %v176_v52 }
 0x1a2   :  { %v164_v53 = vpop.f32.mrf.mxu2  ;;  %v177_v54 = vpop.f32.mrf.mxu3 }
 0x1a3   :  { %v572_v55 = vpop.eup %571 }
 0x1a4   :  { %v574_v56 = vpop.eup %573  ;;  %v181_v57 = vpack.c.bf16 %v572_v55, %v572_v55 }
 0x1a5   :  { %v182_v58 = vpack.c.bf16 %v574_v56, %v574_v56 }
 0x1a6   :  { %323 = vmatmul.bf16.vlgmr.msrb.gmra.mxu0 %v181_v57 }
 0x1a7   :  { %336 = vmatmul.bf16.vlgmr.msrb.gmra.mxu1 %v182_v58 }
 0x223   :  { %v324_v63 = vpop.f32.mrf.mxu0 }
 0x224   :  { %v325_v0 = vadd.f32 %v564_v62, %v324_v63  ;;  %v337_v1 = vpop.f32.mrf.mxu1 }
 0x226   :  { %v338_v2 = vadd.f32 %v337_v1, %v325_v0 }
 0x228   :  { %575 = vtanh.f32 %v338_v2 }
 0x22b   :  { %v326_v3 = vpop.f32.mrf.mxu0 }
 0x22c   :  { %v339_v4 = vpop.f32.mrf.mxu1 }
 0x22e   :  { %v576_v5 = vpop.eup %575 }
 0x22f   :  { %v342_v6 = vpack.c.bf16 %v576_v5, %v576_v5 }
 0x231   :  { %534 = vmatmul.msk.bf16.vlgmr.msrb.gmra.mxu2 %vm101_vm1, %v342_v6 }
 0x2b4   :  { %v375_v8 = vpop.f32.mrf.mxu2 }
 0x2b5   :  { %v376_v9 = vadd.f32 %v565_v7, %v375_v8 }
 0x2b7   :  { %577 = vtanh.f32 %v376_v9 }
 0x2bc   :  { %v377_v10 = vpop.f32.mrf.mxu2 }
 0x2bd   :  { %v578_v11 = vpop.eup %577 }
 0x2be   :  { %v380_v12 = vpack.c.bf16 %v578_v11, %v578_v11 }
 0x2c0   :  { %535 = vmatmul.msk.bf16.vlgmr.msrb.gmra.mxu3 %vm386_vm3, %v380_v12 }
 0x343   :  { %v403_v14 = vpop.f32.mrf.mxu3 }
 0x344   :  { %v404_v15 = vadd.f32 %v566_v13, %v403_v14 }
 0x346   :  { %579 = vtanh.f32 %v404_v15 }
 0x34b   :  { %v405_v17 = vpop.f32.mrf.mxu3 }
 0x34c   :  { %v580_v18 = vpop.eup %579 }
 0x34d   :  { %v409_v19 = vsub.f32 %v408_v16, %v580_v18 }
 0x34f   :  { %v410_v20 = vmul.f32 %v409_v19, %v409_v19 }
 0x351   :  { %v411_v21 = vsel %vm386_vm3, %v410_v20, 0.0 }
 0x352   :  { %412 = vadd.xlane.f32.xlu0 %v411_v21 }
 0x366   :  { %419 = vrot.lane.b32.xlu0 %v404_v15, %s581_s11 }
 0x3c5   :  { %v413_v22 = vpop.xlane.xlu0 %412 }
 0x3c6   :  { %v414_v23 = vmul.f32 2.0, %v413_v22 }
 0x3c8   :  { %v415_v24 = vadd.f32 14.703016, %v414_v23 }
 0x3ca   :  { %v416_v25 = vadd.f32 -5.5451775, %v415_v24 }
 0x3cc   :  { %v417_v26 = vmul.f32 -0.5, %v416_v25 }
 0x3d8   :  { %v420_v27 = vpop.permute.xlu0 %419 }
 0x3d9   :  { %v423_v28 = vsel %vm422_vm4, %v417_v26, %v420_v27 }
 0x3da   :  { %425 = vst.msk [vmem:[%s792_s14] sm:$0xff] %vm424_vm5, %v423_v28 }

</bundles_post_ra>
